<compile_context>
chip_gen: v5e
topology: v5e:2x2
jax: 0.10.0
libtpu: 0.0.40
codegen_flags: <defaults>
</compile_context>

<pallas_src>
import jax
import jax.numpy as jnp
from jax.experimental import pallas as pl
from jax.experimental.pallas import tpu as pltpu


def _round_up(n, m):
    return ((n + m - 1) // m) * m


def highway_kernel(x_ref, wp_ref, bp_ref, wg_ref, bg_ref, o_ref):
    x_in = x_ref[...]                             # (tile_n, E), f32 or bf16
    x = x_in.astype(jnp.float32)

    # Projection: relu(x @ Wp^T + bp). MXU matmul in the weights' dtype
    # (bf16 fast path or f32 path), always with f32 accumulation.
    proj = jnp.dot(x_in.astype(wp_ref.dtype), wp_ref[...],
                   preferred_element_type=jnp.float32)
    proj = jnp.maximum(proj + bp_ref[...], 0.0)

    # Gate: sigmoid(proj @ Wg^T + bg). The gate depends on proj (per the
    # module spec), so this matmul cannot be fused with the first one.
    gate = jnp.dot(proj.astype(wg_ref.dtype), wg_ref[...],
                   preferred_element_type=jnp.float32)
    gate = jax.nn.sigmoid(gate + bg_ref[...])     # exp on the EUP

    # gate*proj + (1-gate)*x  ==  x + gate*(proj - x)   (one fewer VPU op)
    o_ref[...] = (x + gate * (proj - x)).astype(o_ref.dtype)


def highway(x, wp_t, bp, wg_t, bg, *, tile_n=None, mxu_bf16=True):
    """Highway forward.

    x:     (..., E) activations, f32 or bf16. Output matches x's shape/dtype.
    wp_t:  (E, E) projection weight, pre-transposed so proj = x @ wp_t + bp.
    wg_t:  (E, E) gate weight, pre-transposed.
    bp/bg: (E,) or (1, E) biases.
    mxu_bf16: True  -> bf16 MXU inputs, f32 accumulation (fast path);
              False -> f32 MXU inputs (tighter numerics, slower).
    """
    orig_shape = x.shape
    E = orig_shape[-1]
    x2 = x.reshape(-1, E)
    N = x2.shape[0]

    # Row-tile selection:
    #  * big tiles (default target 512 rows) amortize per-grid-step overhead
    #    and fill the MXU,
    #  * at large N this gives grid >= 4, i.e. >= 2 steps per v7x TensorCore
    #    so the x-in / out DMAs stay hidden behind compute,
    #  * ragged N: pad rows to a multiple of tile_n, slice the output back.
    if tile_n is None:
        tile_n = 512
    tile_n = max(8, _round_up(min(tile_n, _round_up(N, 8)), 8))
    n_pad = _round_up(N, tile_n)
    if n_pad != N:
        x2 = jnp.pad(x2, ((0, n_pad - N), (0, 0)))
    grid = (n_pad // tile_n,)

    w_dtype = jnp.bfloat16 if mxu_bf16 else jnp.float32
    wp_c = wp_t.astype(w_dtype)
    wg_c = wg_t.astype(w_dtype)
    bp_c = jnp.asarray(bp, jnp.float32).reshape(1, E)
    bg_c = jnp.asarray(bg, jnp.float32).reshape(1, E)

    itemsize = jnp.dtype(x2.dtype).itemsize
    w_itemsize = jnp.dtype(w_dtype).itemsize
    cost = pl.CostEstimate(
        flops=4 * n_pad * E * E,                   # two (n,E) x (E,E) matmuls
        transcendentals=n_pad * E,                 # sigmoid exp
        bytes_accessed=(2 * n_pad * E * itemsize   # x in + out
                        + 2 * E * E * w_itemsize   # two weight matrices
                        + 2 * E * 4),              # two f32 bias rows
    )

    out = pl.pallas_call(
        highway_kernel,
        out_shape=jax.ShapeDtypeStruct((n_pad, E), x2.dtype),
        grid_spec=pltpu.PrefetchScalarGridSpec(
            num_scalar_prefetch=0,
            grid=grid,
            in_specs=[
                pl.BlockSpec((tile_n, E), lambda i: (i, 0)),  # x row tile
                pl.BlockSpec((E, E), lambda i: (0, 0)),       # Wp^T (resident)
                pl.BlockSpec((1, E), lambda i: (0, 0)),       # bp
                pl.BlockSpec((E, E), lambda i: (0, 0)),       # Wg^T (resident)
                pl.BlockSpec((1, E), lambda i: (0, 0)),       # bg
            ],
            out_specs=pl.BlockSpec((tile_n, E), lambda i: (i, 0)),
        ),
        compiler_params=pltpu.CompilerParams(
            dimension_semantics=("parallel",),
        ),
        cost_estimate=cost,
    )(x2, wp_c, bp_c, wg_c, bg_c)
    # TODO(synk): when E grows toward 2K+, single-buffer the constant-index
    # weight operands (pipeline_mode=pl.Buffered(1)), set vmem_limit_bytes
    # explicitly, and switch to K-tiling with an f32 accumulator + pl.when
    # init/finalize (v7x only has 64 MiB physical / 32 MiB default VMEM).

    if n_pad != N:
        out = out[:N]
    return out.reshape(orig_shape)


def highway_ref_f32(x, wp_t, bp, wg_t, bg):
    """Exact f32 reference (matches the PyTorch module's math)."""
    hp = jax.lax.Precision.HIGHEST
    proj = jnp.maximum(jnp.dot(x, wp_t, precision=hp) + bp, 0.0)
    gate = jax.nn.sigmoid(jnp.dot(proj, wg_t, precision=hp) + bg)
    return gate * proj + (1.0 - gate) * x


def highway_ref_bf16(x, wp_t, bp, wg_t, bg):
    """Reference mirroring the kernel's bf16-matmul / f32-accumulate numerics."""
    proj = jnp.dot(x.astype(jnp.bfloat16), wp_t.astype(jnp.bfloat16),
                   preferred_element_type=jnp.float32) + bp
    proj = jnp.maximum(proj, 0.0)
    gate = jax.nn.sigmoid(
        jnp.dot(proj.astype(jnp.bfloat16), wg_t.astype(jnp.bfloat16),
                preferred_element_type=jnp.float32) + bg)
    return gate * proj + (1.0 - gate) * x


if __name__ == "__main__":
    e_word = 128                 # lane-aligned hidden width
    sent_len, batch = 5, 4       # N = 20 rows -> exercises ragged-N padding

    key = jax.random.PRNGKey(0)
    kx, kwp, kbp, kwg, kbg = jax.random.split(key, 5)
    x = jax.random.normal(kx, (sent_len, batch, e_word), dtype=jnp.float32)
    # nn.Linear weights are (out, in); store the transpose (in, out) for x @ W.
    wp_t = (jax.random.normal(kwp, (e_word, e_word), dtype=jnp.float32) * 0.05).T
    bp = jax.random.normal(kbp, (1, e_word), dtype=jnp.float32) * 0.05
    wg_t = (jax.random.normal(kwg, (e_word, e_word), dtype=jnp.float32) * 0.05).T
    bg = jax.random.normal(kbg, (1, e_word), dtype=jnp.float32) * 0.05

    ref_f32 = highway_ref_f32(x, wp_t, bp, wg_t, bg)
    ref_bf = highway_ref_bf16(x, wp_t, bp, wg_t, bg)

    # 1) Default fast path: bf16 MXU inputs, f32 accumulate / elementwise.
    out_bf = jax.block_until_ready(highway(x, wp_t, bp, wg_t, bg))
    assert out_bf.shape == x.shape and out_bf.dtype == x.dtype
    assert jnp.allclose(out_bf, ref_bf, atol=1e-4, rtol=1e-4), \
        "mismatch vs bf16-matmul JAX reference"
    assert jnp.allclose(out_bf, ref_f32, atol=3e-2, rtol=3e-2), \
        "mismatch vs exact f32 JAX reference (loose)"

    # 2) f32-matmul path (tighter numerics for callers that need them).
    out_f32 = jax.block_until_ready(
        highway(x, wp_t, bp, wg_t, bg, mxu_bf16=False))
    assert jnp.allclose(out_f32, ref_f32, atol=1e-2, rtol=1e-2), \
        "f32 path mismatch vs exact f32 JAX reference"

    # 3) bf16 activation I/O (halves HBM traffic; internal math stays f32).
    out_b16io = jax.block_until_ready(
        highway(x.astype(jnp.bfloat16), wp_t, bp, wg_t, bg))
    assert out_b16io.dtype == jnp.bfloat16
    assert jnp.allclose(out_b16io.astype(jnp.float32), ref_f32,
                        atol=6e-2, rtol=6e-2), \
        "bf16-I/O path mismatch vs exact f32 JAX reference"

    print("KERNEL_OK")
</pallas_src>

<mosaic_0001>
module attributes {stable_mosaic.version = 11 : i64} {
  func.func @highway_kernel(%arg0: i32, %arg1: memref<24x128xf32, #tpu.memory_space<vmem>>, %arg2: memref<128x128xbf16, #tpu.memory_space<vmem>>, %arg3: memref<1x128xf32, #tpu.memory_space<vmem>>, %arg4: memref<128x128xbf16, #tpu.memory_space<vmem>>, %arg5: memref<1x128xf32, #tpu.memory_space<vmem>>, %arg6: memref<24x128xf32, #tpu.memory_space<vmem>>) attributes {dimension_semantics = [#tpu.dimension_semantics<parallel>], iteration_bounds = array<i64: 1>, scalar_prefetch = 0 : i64, scratch_operands = 0 : i64, tpu.core_type = #tpu.core_type<tc>, window_params = [{transform_indices = @transform_0, window_bounds = array<i64: 24, 128>}, {pipeline_mode = #tpu.pipeline_mode<synchronous>, transform_indices = @transform_1, window_bounds = array<i64: 128, 128>}, {pipeline_mode = #tpu.pipeline_mode<synchronous>, transform_indices = @transform_2, window_bounds = array<i64: 1, 128>}, {pipeline_mode = #tpu.pipeline_mode<synchronous>, transform_indices = @transform_3, window_bounds = array<i64: 128, 128>}, {pipeline_mode = #tpu.pipeline_mode<synchronous>, transform_indices = @transform_4, window_bounds = array<i64: 1, 128>}, {transform_indices = @transform_5, window_bounds = array<i64: 24, 128>}]} {
    %c0 = arith.constant 0 : index
    %c0_0 = arith.constant 0 : index
    %0 = vector.load %arg1[%c0, %c0_0] : memref<24x128xf32, #tpu.memory_space<vmem>>, vector<24x128xf32>
    %1 = arith.truncf %0 : vector<24x128xf32> to vector<24x128xbf16>
    %c0_1 = arith.constant 0 : index
    %c0_2 = arith.constant 0 : index
    %2 = vector.load %arg2[%c0_1, %c0_2] : memref<128x128xbf16, #tpu.memory_space<vmem>>, vector<128x128xbf16>
    %cst = arith.constant dense<0.000000e+00> : vector<24x128xf32>
    %3 = tpu.matmul %1, %2, %cst {dimension_numbers = #tpu.dot_dimension_numbers<[1], [0], [0], [1], [0, 0, 1, 1], [], []>} : vector<24x128xbf16>, vector<128x128xbf16>, vector<24x128xf32> -> vector<24x128xf32>
    %c0_3 = arith.constant 0 : index
    %c0_4 = arith.constant 0 : index
    %4 = vector.load %arg3[%c0_3, %c0_4] : memref<1x128xf32, #tpu.memory_space<vmem>>, vector<1x128xf32>
    %5 = vector.broadcast %4 : vector<1x128xf32> to vector<24x128xf32>
    %6 = arith.addf %3, %5 : vector<24x128xf32>
    %cst_5 = arith.constant 0.000000e+00 : f32
    %7 = vector.broadcast %cst_5 : f32 to vector<24x128xf32>
    %8 = arith.maximumf %6, %7 : vector<24x128xf32>
    %9 = arith.truncf %8 : vector<24x128xf32> to vector<24x128xbf16>
    %c0_6 = arith.constant 0 : index
    %c0_7 = arith.constant 0 : index
    %10 = vector.load %arg4[%c0_6, %c0_7] : memref<128x128xbf16, #tpu.memory_space<vmem>>, vector<128x128xbf16>
    %cst_8 = arith.constant dense<0.000000e+00> : vector<24x128xf32>
    %11 = tpu.matmul %9, %10, %cst_8 {dimension_numbers = #tpu.dot_dimension_numbers<[1], [0], [0], [1], [0, 0, 1, 1], [], []>} : vector<24x128xbf16>, vector<128x128xbf16>, vector<24x128xf32> -> vector<24x128xf32>
    %c0_9 = arith.constant 0 : index
    %c0_10 = arith.constant 0 : index
    %12 = vector.load %arg5[%c0_9, %c0_10] : memref<1x128xf32, #tpu.memory_space<vmem>>, vector<1x128xf32>
    %13 = vector.broadcast %12 : vector<1x128xf32> to vector<24x128xf32>
    %14 = arith.addf %11, %13 : vector<24x128xf32>
    %15 = arith.negf %14 : vector<24x128xf32>
    %16 = math.exp %15 : vector<24x128xf32>
    %cst_11 = arith.constant 1.000000e+00 : f32
    %17 = vector.broadcast %cst_11 : f32 to vector<24x128xf32>
    %18 = arith.addf %17, %16 : vector<24x128xf32>
    %19 = arith.divf %17, %18 : vector<24x128xf32>
    %20 = arith.subf %8, %0 : vector<24x128xf32>
    %21 = arith.mulf %19, %20 : vector<24x128xf32>
    %22 = arith.addf %0, %21 : vector<24x128xf32>
    %c0_12 = arith.constant 0 : index
    %c0_13 = arith.constant 0 : index
    %23 = vector.load %arg6[%c0_12, %c0_13] : memref<24x128xf32, #tpu.memory_space<vmem>>, vector<24x128xf32>
    tpu.vector_store %arg6[%c0_12, %c0_13], %22 {strides = array<i32>} : memref<24x128xf32, #tpu.memory_space<vmem>>, vector<24x128xf32>,
    return
  }
  func.func @transform_0(%arg0: i32) -> (i32, i32) {
    %c0_i32 = arith.constant 0 : i32
    %c0_i32_0 = arith.constant 0 : i32
    return %arg0, %c0_i32 : i32, i32
  }
  func.func @transform_1(%arg0: i32) -> (i32, i32) {
    %c0_i32 = arith.constant 0 : i32
    %c0_i32_0 = arith.constant 0 : i32
    %c0_i32_1 = arith.constant 0 : i32
    return %c0_i32, %c0_i32_0 : i32, i32
  }
  func.func @transform_2(%arg0: i32) -> (i32, i32) {
    %c0_i32 = arith.constant 0 : i32
    %c0_i32_0 = arith.constant 0 : i32
    %c0_i32_1 = arith.constant 0 : i32
    return %c0_i32, %c0_i32_0 : i32, i32
  }
  func.func @transform_3(%arg0: i32) -> (i32, i32) {
    %c0_i32 = arith.constant 0 : i32
    %c0_i32_0 = arith.constant 0 : i32
    %c0_i32_1 = arith.constant 0 : i32
    return %c0_i32, %c0_i32_0 : i32, i32
  }
  func.func @transform_4(%arg0: i32) -> (i32, i32) {
    %c0_i32 = arith.constant 0 : i32
    %c0_i32_0 = arith.constant 0 : i32
    %c0_i32_1 = arith.constant 0 : i32
    return %c0_i32, %c0_i32_0 : i32, i32
  }
  func.func @transform_5(%arg0: i32) -> (i32, i32) {
    %c0_i32 = arith.constant 0 : i32
    %c0_i32_0 = arith.constant 0 : i32
    return %arg0, %c0_i32 : i32, i32
  }
}

</mosaic_0001>

<bundles_post_ra>
// kernel: tpu_custom_call.1
= control target key start
LH: loop header
LB: loop body
LE: loop exit
PB: predicated region body
PF: predicated region fallthrough
CT: control target
= control target key end

     0   :  { %10 = vsyncpa [#allocation3], 0  ;;  %s652_s0 = inlined_call_operand.hbm [shape: f32[24,128], index: 0, kind: input, shape index: {}]   ;;  %s653_s1 = inlined_call_operand.hbm [shape: bf16[128,128], index: 1, kind: input, shape index: {}]   ;;  %s654_s2 = inlined_call_operand.vmem [shape: f32[1,128], index: 2, kind: input, shape index: {}]   ;;  %s655_s3 = inlined_call_operand.hbm [shape: bf16[128,128], index: 3, kind: input, shape index: {}]   ;;  %s656_s4 = inlined_call_operand.vmem [shape: f32[1,128], index: 4, kind: input, shape index: {}]   ;;  %s657_s5 = inlined_call_operand.hbm [shape: f32[24,128], index: 5, kind: output, shape index: {}]  }
   0x1   :  { %11 = vsyncpa [#allocation6], 0  ;;  %s30_s20 = sshll.u32 %s653_s1, 4  ;;  %s31_s20 = int_to_ptr.hbm [resolvable:$true] %s30_s20 }
   0x2   :  { %12 = vsyncpa [#allocation4], 0  ;;  %s562_s21 = smov [#allocation5]   ;;  %s17_s25 = sshll.u32 %s652_s0, 4  ;;  %s18_s25 = int_to_ptr.hbm [resolvable:$true] %s17_s25 }
   0x3   :  { %s32_s22 = sshll.u32 %s562_s21, 4  ;;  %s563_s26 = smov 64   ;;  %s33_s22 = int_to_ptr.vmem [resolvable:$true] %s32_s22 }
   0x4   :  { %s564_s27 = smov 4   ;;  %s565_s28 = smov [#allocation2]  }
   0x5   :  { %38 = dma.hbm_to_vmem [thread:$0]  %s31_s20, 1024, %s33_s22, [#allocation6], %s563_s26, %s563_s26, %s564_s27  }
   0x6   :  { %s19_s29 = sshll.u32 %s565_s28, 4  ;;  %s566_s30 = smov 128   ;;  %s20_s29 = int_to_ptr.vmem [resolvable:$true] %s19_s29 }
   0x7   :  { %s567_s6 = smov 8   ;;  %s45_s8 = sshll.u32 %s655_s3, 4  ;;  %s46_s8 = int_to_ptr.hbm [resolvable:$true] %s45_s8 }
   0x8   :  { %25 = dma.hbm_to_vmem [thread:$0]  %s18_s25, 384, %s20_s29, [#allocation3], %s566_s30, %s566_s30, %s567_s6  }
   0x9   :  { %s568_s9 = smov [#allocation7]  }
   0xa   :  { %s47_s0 = sshll.u32 %s568_s9, 4  ;;  %s48_s0 = int_to_ptr.vmem [resolvable:$true] %s47_s0 }
   0xb   :  { %53 = dma.hbm_to_vmem [thread:$0]  %s46_s8, 1024, %s48_s0, [#allocation6], %s563_s26, %s563_s26, %s564_s27  }
   0xc   :  { %556 = dma.done.wait [#allocation3], 384  }
   0xd   :  { %557 = vsyncadd [#allocation3], 4294966912 }
   0xe   :  { %558 = dma.done.wait [#allocation6], 2048  }
   0xf   :  { %559 = vsyncadd [#allocation6], 4294965248  ;;  %v413_v0 = vld [vmem:[#allocation5 + $0x38] sm:$0xff]  ;;  %v412_v1 = vld [vmem:[#allocation5 + $0x30] sm:$0xff]  ;;  %s325_s15 = sshll.u32 %s657_s5, 4  ;;  %s326_s15 = int_to_ptr.hbm [resolvable:$true] %s325_s15 }
  0x10   :  { %141 = vmatpush.bf16.msra.mxu0 %v413_v0  ;;  %422 = vmatpush.bf16.msra.mxu2 %v413_v0  ;;  %v421_v2 = vld [vmem:[#allocation7 + $0x38] sm:$0xff]  ;;  %v420_v3 = vld [vmem:[#allocation7 + $0x30] sm:$0xff]  ;;  %v411_v4 = vld [vmem:[#allocation5 + $0x28] sm:$0xff] }
  0x11   :  { %430 = vmatpush.bf16.msra.mxu3 %v421_v2  ;;  %232 = vmatpush.bf16.msra.mxu1 %v421_v2  ;;  %v419_v5 = vld [vmem:[#allocation7 + $0x28] sm:$0xff]  ;;  %v410_v6 = vld [vmem:[#allocation5 + $0x20] sm:$0xff]  ;;  %v409_v8 = vld [vmem:[#allocation5 + $0x18] sm:$0xff] }
  0x12   :  { %v418_v7 = vld [vmem:[#allocation7 + $0x20] sm:$0xff]  ;;  %v417_v9 = vld [vmem:[#allocation7 + $0x18] sm:$0xff]  ;;  %v408_v10 = vld [vmem:[#allocation5 + $0x10] sm:$0xff] }
  0x13   :  { %v407_v11 = vld [vmem:[#allocation5 + $0x8] sm:$0xff]  ;;  %v406_v12 = vld [vmem:[#allocation5] sm:$0xff]  ;;  %v614_v14 = vld [vmem:[#allocation2 + $0x8] sm:$0xff] }
  0x14   :  { %142 = vmatpush.bf16.msra.mxu0 %v412_v1  ;;  %423 = vmatpush.bf16.msra.mxu2 %v412_v1  ;;  %v612_v13 = vld [vmem:[#allocation2] sm:$0xff]  ;;  %v616_v15 = vld [vmem:[#allocation2 + $0x10] sm:$0xff]  ;;  %v416_v18 = vld [vmem:[#allocation7 + $0x10] sm:$0xff] }
  0x15   :  { %431 = vmatpush.bf16.msra.mxu3 %v420_v3  ;;  %233 = vmatpush.bf16.msra.mxu1 %v420_v3  ;;  %v71_v16 = vpack.c.bf16 %v614_v14, %v612_v13  ;;  %v72_v17 = vpack.c.bf16 %v616_v15, %v616_v15  ;;  %v415_v19 = vld [vmem:[#allocation7 + $0x8] sm:$0xff]  ;;  %v414_v20 = vld [vmem:[#allocation7] sm:$0xff] }
  0x16   :  { %v446_v22 = vld [vmem:[%s654_s2] ss:$0 sm:$0xff] }
  0x17   :  { %v447_v34 = vld [vmem:[%s656_s4] ss:$0 sm:$0xff]  ;;  %s569_s4 = smov [#allocation8]  }
  0x18   :  { %143 = vmatpush.bf16.msra.mxu0 %v411_v4  ;;  %424 = vmatpush.bf16.msra.mxu2 %v411_v4  ;;  %s323_s12 = sshll.u32 %s569_s4, 4  ;;  %s324_s12 = int_to_ptr.vmem [resolvable:$true] %s323_s12 }
  0x19   :  { %432 = vmatpush.bf16.msra.mxu3 %v419_v5  ;;  %234 = vmatpush.bf16.msra.mxu1 %v419_v5 }
  0x1c   :  { %144 = vmatpush.bf16.msra.mxu0 %v410_v6  ;;  %425 = vmatpush.bf16.msra.mxu2 %v410_v6 }
  0x1d   :  { %433 = vmatpush.bf16.msra.mxu3 %v418_v7  ;;  %235 = vmatpush.bf16.msra.mxu1 %v418_v7 }
  0x20   :  { %145 = vmatpush.bf16.msra.mxu0 %v409_v8  ;;  %426 = vmatpush.bf16.msra.mxu2 %v409_v8 }
  0x21   :  { %434 = vmatpush.bf16.msra.mxu3 %v417_v9  ;;  %236 = vmatpush.bf16.msra.mxu1 %v417_v9 }
  0x24   :  { %146 = vmatpush.bf16.msra.mxu0 %v408_v10  ;;  %427 = vmatpush.bf16.msra.mxu2 %v408_v10 }
  0x25   :  { %435 = vmatpush.bf16.msra.mxu3 %v416_v18  ;;  %237 = vmatpush.bf16.msra.mxu1 %v416_v18 }
  0x28   :  { %147 = vmatpush.bf16.msra.mxu0 %v407_v11  ;;  %428 = vmatpush.bf16.msra.mxu2 %v407_v11 }
  0x29   :  { %436 = vmatpush.bf16.msra.mxu3 %v415_v19  ;;  %238 = vmatpush.bf16.msra.mxu1 %v415_v19 }
  0x2c   :  { %148 = vmatpush.bf16.msra.mxu0 %v406_v12  ;;  %429 = vmatpush.bf16.msra.mxu2 %v406_v12 }
  0x2d   :  { %437 = vmatpush.bf16.msra.mxu3 %v414_v20  ;;  %239 = vmatpush.bf16.msra.mxu1 %v414_v20 }
  0x2f   :  { %149 = vmatmul.bf16.vlgmr.msra.gmra.mxu0 %v71_v16  ;;  %154 = vmatmul.bf16.vlgmr.msra.gmra.mxu2 %v72_v17 }
  0xac   :  { %v150_v21 = vpop.f32.mrf.mxu0 }
  0xad   :  { %v151_v24 = vadd.f32 %v446_v22, %v150_v21 }
  0xaf   :  { %v159_v29 = vmax.f32 %v151_v24, 0.0 }
  0xb1   :  { %v307_v59 = vsub.f32 %v159_v29, %v612_v13 }
  0xb2   :  { %v155_v23 = vpop.f32.mrf.mxu2 }
  0xb3   :  { %v156_v25 = vadd.f32 %v446_v22, %v155_v23 }
  0xb4   :  { %v152_v26 = vpop.f32.mrf.mxu0 }
  0xb5   :  { %v625_v27 = vmax.f32 %v156_v25, 0.0  ;;  %v627_v28 = vadd.f32 %v446_v22, %v152_v26 }
  0xb7   :  { %v160_v30 = vmax.f32 %v627_v28, 0.0  ;;  %v163_v31 = vpack.c.bf16 %v625_v27, %v625_v27  ;;  %v309_v5 = vsub.f32 %v625_v27, %v616_v15 }
  0xb9   :  { %245 = vmatmul.bf16.vlgmr.msra.gmra.mxu3 %v163_v31  ;;  %v162_v32 = vpack.c.bf16 %v160_v30, %v159_v29  ;;  %v308_v23 = vsub.f32 %v160_v30, %v614_v14 }
  0xba   :  { %v157_v33 = vpop.f32.mrf.mxu2 }
  0xbb   :  { %240 = vmatmul.bf16.vlgmr.msra.gmra.mxu1 %v162_v32 }
 0x138   :  { %v241_v35 = vpop.f32.mrf.mxu1 }
 0x139   :  { %v242_v36 = vadd.f32 %v447_v34, %v241_v35 }
 0x13b   :  { %v403_v37 = vmul.f32 -1.442695, %v242_v36 }
 0x13c   :  { %v246_v38 = vpop.f32.mrf.mxu3 }
 0x13d   :  { %448 = vpow2.f32 %v403_v37  ;;  %v247_v39 = vadd.f32 %v447_v34, %v246_v38 }
 0x13f   :  { %v405_v40 = vmul.f32 -1.442695, %v247_v39 }
 0x140   :  { %v243_v41 = vpop.f32.mrf.mxu1 }
 0x141   :  { %450 = vpow2.f32 %v405_v40  ;;  %v244_v42 = vadd.f32 %v447_v34, %v243_v41 }
 0x143   :  { %v449_v43 = vpop.eup %448  ;;  %v404_v44 = vmul.f32 -1.442695, %v244_v42 }
 0x144   :  { %v259_v45 = vadd.f32 1.0, %v449_v43  ;;  %v248_v46 = vpop.f32.mrf.mxu3 }
 0x145   :  { %452 = vpow2.f32 %v404_v44 }
 0x146   :  { %454 = vrcp.f32 %v259_v45  ;;  %v271_v55 = vand.u32 2147483647, %v259_v45  ;;  %v273_v56 = vand.u32 2147483648, %v259_v45  ;;  %vm267_vm1 = vweird.f32 %v259_v45 }
 0x147   :  { %v451_v47 = vpop.eup %450 }
 0x148   :  { %v261_v48 = vadd.f32 1.0, %v451_v47  ;;  %v274_v63 = vor.u32 1.1754944e-38, %v273_v56  ;;  %vm272_vm3 = vcmp.eq.f32.partialorder %v271_v55, 8.507059e+37 }
 0x14a   :  { %456 = vrcp.f32 %v261_v48  ;;  %v301_v0 = vand.u32 2147483647, %v261_v48  ;;  %v303_v1 = vand.u32 2147483648, %v261_v48  ;;  %vm297_vm5 = vweird.f32 %v261_v48 }
 0x14b   :  { %v453_v49 = vpop.eup %452 }
 0x14c   :  { %v455_v50 = vpop.eup %454  ;;  %v260_v51 = vadd.f32 1.0, %v453_v49  ;;  %v304_v10 = vor.u32 1.1754944e-38, %v303_v1  ;;  %vm302_vm7 = vcmp.eq.f32.partialorder %v301_v0, 8.507059e+37 }
 0x14d   :  { %v263_v52 = vmul.f32 %v455_v50, %v259_v45  ;;  %vm268_vm0 = vweird.f32 %v455_v50 }
 0x14e   :  { %458 = vrcp.f32 %v260_v51  ;;  %vm269_vm2 = vmor %vm267_vm1, %vm268_vm0  ;;  %v286_v11 = vand.u32 2147483647, %v260_v51  ;;  %v288_v12 = vand.u32 2147483648, %v260_v51  ;;  %vm282_vm9 = vweird.f32 %v260_v51 }
 0x14f   :  { %v264_v53 = vsub.f32 1.0, %v263_v52 }
 0x150   :  { %v457_v54 = vpop.eup %456  ;;  %v289_v22 = vor.u32 1.1754944e-38, %v288_v12  ;;  %vm287_vm11 = vcmp.eq.f32.partialorder %v286_v11, 8.507059e+37 }
 0x151   :  { %v265_v57 = vmul.f32 %v455_v50, %v264_v53  ;;  %v293_v58 = vmul.f32 %v457_v54, %v261_v48  ;;  %vm298_vm4 = vweird.f32 %v457_v54 }
 0x152   :  { %vm299_vm6 = vmor %vm297_vm5, %vm298_vm4 }
 0x153   :  { %v294_v60 = vsub.f32 1.0, %v293_v58  ;;  %v266_v61 = vadd.f32 %v455_v50, %v265_v57 }
 0x154   :  { %v459_v62 = vpop.eup %458 }
 0x155   :  { %v295_v2 = vmul.f32 %v457_v54, %v294_v60  ;;  %v278_v3 = vmul.f32 %v459_v62, %v260_v51  ;;  %v270_v4 = vsel %vm269_vm2, %v455_v50, %v266_v61  ;;  %vm283_vm8 = vweird.f32 %v459_v62 }
 0x156   :  { %v275_v6 = vsel %vm272_vm3, %v274_v63, %v270_v4  ;;  %vm284_vm10 = vmor %vm282_vm9, %vm283_vm8 }
 0x157   :  { %v279_v7 = vsub.f32 1.0, %v278_v3  ;;  %v296_v8 = vadd.f32 %v457_v54, %v295_v2  ;;  %v310_v9 = vmul.f32 %v307_v59, %v275_v6 }
 0x159   :  { %v280_v16 = vmul.f32 %v459_v62, %v279_v7  ;;  %v300_v17 = vsel %vm299_vm6, %v457_v54, %v296_v8  ;;  %v313_v18 = vadd.f32 %v310_v9, %v612_v13 }
 0x15a   :  { %v305_v19 = vsel %vm302_vm7, %v304_v10, %v300_v17 }
 0x15b   :  { %v281_v20 = vadd.f32 %v459_v62, %v280_v16  ;;  %v312_v21 = vmul.f32 %v309_v5, %v305_v19  ;;  %316 = vst [vmem:[#allocation8] sm:$0xff] %v313_v18 }
 0x15d   :  { %v285_v24 = vsel %vm284_vm10, %v459_v62, %v281_v20  ;;  %v315_v25 = vadd.f32 %v312_v21, %v616_v15 }
 0x15e   :  { %v290_v26 = vsel %vm287_vm11, %v289_v22, %v285_v24 }
 0x15f   :  { %v311_v13 = vmul.f32 %v308_v23, %v290_v26  ;;  %318 = vst [vmem:[#allocation8 + $0x10] sm:$0xff] %v315_v25 }
 0x161   :  { %v314_v27 = vadd.f32 %v311_v13, %v614_v14 }
 0x163   :  { %317 = vst [vmem:[#allocation8 + $0x8] sm:$0xff] %v314_v27 }
 0x164   :  { %331 = dma.vmem_to_hbm [thread:$0]  %s324_s12, 384, %s326_s15, [#allocation4], %s566_s30, %s566_s30, %s567_s6  }
 0x165   :  { %560 = dma.done.wait [#allocation4], 384  }
 0x166   :  { %561 = vsyncadd [#allocation4], 4294966912 }
 0x167   :  { %336 = vsyncpa [#allocation3], 1 }
 0x168   :  { %337 = vsyncpa [#allocation6], 1 }
 0x169   :  { %338 = vsyncpa [#allocation4], 1 }

</bundles_post_ra>
